<compile_context>
chip_gen: v7x
topology: tpu7x:2x2x1
jax: 0.10.0
libtpu: 0.0.40
codegen_flags: <defaults>
</compile_context>

<pallas_src>
import functools

import jax
import jax.numpy as jnp
from jax import lax
from jax.experimental import pallas as pl
from jax.experimental.pallas import tpu as pltpu


def _bn_kernel(x_ref, gamma_ref, beta_ref, o_ref, *, eps, inv_count):
    """One channel-tile of training-mode BatchNorm2d.

    x_ref / o_ref     : (R, tc) block — reduction rows on sublanes, channels on lanes.
    gamma_ref/beta_ref: (1, tc) lane-major per-channel affine parameters.
    """
    x = x_ref[...]                                   # (R, tc) native dtype
    xf = x.astype(jnp.float32)

    # Fused single pass: sum and sum-of-squares (var = E[x^2] - mean^2).
    s1 = jnp.sum(xf, axis=0, keepdims=True)          # (1, tc)
    s2 = jnp.sum(xf * xf, axis=0, keepdims=True)     # (1, tc)
    mean = s1 * inv_count
    var = s2 * inv_count - mean * mean
    var = jnp.maximum(var, 0.0)                      # guard tiny cancellation negatives
    inv_std = lax.rsqrt(var + eps)                   # (1, tc)

    gamma = gamma_ref[...].astype(jnp.float32)       # (1, tc)
    beta = beta_ref[...].astype(jnp.float32)

    # Fold normalization + affine into one per-channel scale/shift so the big
    # (R, tc) elementwise pass is a single multiply-add per element.
    scale = gamma * inv_std
    shift = beta - mean * scale

    if o_ref.dtype == jnp.float32:
        o_ref[...] = xf * scale + shift
    else:
        # Sub-32-bit inputs: stats stay f32, but the dominant elementwise pass
        # runs in the native dtype (bf16 VALUs on v6e/v7x), halving VPU work.
        o_ref[...] = (x * scale.astype(o_ref.dtype)
                      + shift.astype(o_ref.dtype)).astype(o_ref.dtype)


def _padded_block_bytes(rows, cols, itemsize):
    """VMEM-resident bytes of a (rows, cols) block including (sublane, lane) padding."""
    sub = {4: 8, 2: 16, 1: 32}.get(itemsize, 8)
    r_pad = -(-rows // sub) * sub
    c_pad = -(-cols // 128) * 128
    return r_pad * c_pad * itemsize


def _vmem_budget_bytes():
    """Budget for the pipelined in/out blocks; safe across v5e/v6e/v7x."""
    try:
        cap = int(pltpu.get_tpu_info().vmem_capacity_bytes)
    except Exception:
        cap = 64 << 20  # conservative fallback: v7x per-TC physical VMEM
    return min(48 << 20, max(16 << 20, cap // 2))


def _prefer_multi_step():
    """Prefer >= 2 grid steps only where a device has 2 TensorCores."""
    try:
        kind = jax.devices()[0].device_kind.lower()
    except Exception:
        return True  # unknown: keep the safe multi-step preference
    return any(tag in kind for tag in ("v7", "7x", "v4", "v5p", "v5 p"))


def _choose_channel_tile(C, R, itemsize):
    """Pick the channel (lane) tile tc for the (R, C) channels-last slab."""
    if C % 128 != 0:
        # Full-dim blocks are always legal; small-C / ragged-C fallback.
        return C

    budget = _vmem_budget_bytes()

    def fits(tc):
        blk = _padded_block_bytes(R, tc, itemsize)
        f32_tmp = 0 if itemsize == 4 else _padded_block_bytes(R, tc, 4)
        # double-buffered in + out blocks plus in-kernel f32 temporaries
        return 4 * blk + 2 * f32_tmp <= budget

    cands = [128 * d for d in range(1, C // 128 + 1) if C % (128 * d) == 0]
    fitting = [tc for tc in cands if fits(tc)]
    if not fitting:
        # TODO(synk): for huge N*H*W even tc=128 overflows VMEM; an R-chunked
        # two-pass (stats then normalize) scheme would be needed.
        return 128

    if _prefer_multi_step():
        multi = [tc for tc in fitting if C // tc >= 2]
        if multi:
            return max(multi)
    return max(fitting)


def batchnorm2d(x_nchw, gamma, beta, *, eps=1e-5):
    """Training-mode BatchNorm2d forward (batch statistics), matching
    torch.nn.BatchNorm2d(C, eps=eps, affine=True) called in train mode."""
    N, C, H, W = x_nchw.shape
    R = N * H * W
    dtype = x_nchw.dtype
    itemsize = jnp.dtype(dtype).itemsize

    # Channels-last slab: channels on lanes (lane-dense, C multiple of 128 for
    # the real module), reduction rows on sublanes.  Costs one HBM relayout
    # each way (tiny here) but makes every kernel store unmasked and removes
    # ~2.6x lane padding + cross-lane reductions.
    x2d = x_nchw.transpose(0, 2, 3, 1).reshape(R, C)
    gamma2 = gamma.reshape(1, C)
    beta2 = beta.reshape(1, C)

    tc = _choose_channel_tile(C, R, itemsize)
    grid = (C // tc,)

    blk = _padded_block_bytes(R, tc, itemsize)
    f32_tmp = 0 if itemsize == 4 else _padded_block_bytes(R, tc, 4)
    need = 4 * blk + 2 * f32_tmp + (4 << 20)
    vmem_limit = int(min(max(need, 32 << 20), 48 << 20))

    kernel = functools.partial(_bn_kernel, eps=float(eps), inv_count=1.0 / float(R))

    y2d = pl.pallas_call(
        kernel,
        out_shape=jax.ShapeDtypeStruct((R, C), dtype),
        grid_spec=pltpu.PrefetchScalarGridSpec(
            num_scalar_prefetch=0,
            grid=grid,
            in_specs=[
                pl.BlockSpec((R, tc), lambda j: (0, j)),
                pl.BlockSpec((1, tc), lambda j: (0, j)),
                pl.BlockSpec((1, tc), lambda j: (0, j)),
            ],
            out_specs=pl.BlockSpec((R, tc), lambda j: (0, j)),
        ),
        compiler_params=pltpu.CompilerParams(
            dimension_semantics=("parallel",),
            vmem_limit_bytes=vmem_limit,
        ),
    )(x2d, gamma2, beta2)

    return y2d.reshape(N, H, W, C).transpose(0, 3, 1, 2)


if __name__ == "__main__":
    key = jax.random.PRNGKey(0)

    def reference(x, gamma, beta, eps=1e-5):
        C = x.shape[1]
        mean = jnp.mean(x, axis=(0, 2, 3), keepdims=True)
        var = jnp.mean((x - mean) ** 2, axis=(0, 2, 3), keepdims=True)
        return (x - mean) / jnp.sqrt(var + eps) * gamma.reshape(1, C, 1, 1) \
            + beta.reshape(1, C, 1, 1)

    # Small smoke-test shape consistent with the module's 4-D NCHW input.
    N, C, H, W = 2, 4, 16, 16
    k1, k2, k3 = jax.random.split(key, 3)
    x = jax.random.normal(k1, (N, C, H, W), dtype=jnp.float32)
    gamma = 1.0 + 0.1 * jax.random.normal(k2, (C,), dtype=jnp.float32)
    beta = 0.1 * jax.random.normal(k3, (C,), dtype=jnp.float32)

    y = jax.block_until_ready(batchnorm2d(x, gamma, beta, eps=1e-5))
    ref = reference(x, gamma, beta)
    assert y.shape == x.shape and y.dtype == x.dtype
    assert jnp.max(jnp.abs(y - ref)) < 1e-4

    # Also exercise the module's actual shape (1, 2304, 7, 7): lane-dense
    # channels-last blocks (49 sublanes x tc lanes), unmasked stores.
    N2, C2, H2, W2 = 1, 2304, 7, 7
    x2 = jax.random.normal(k1, (N2, C2, H2, W2), dtype=jnp.float32)
    gamma_full = jnp.ones((C2,), dtype=jnp.float32)   # torch default weight
    beta_full = jnp.zeros((C2,), dtype=jnp.float32)   # torch default bias
    y2 = jax.block_until_ready(batchnorm2d(x2, gamma_full, beta_full, eps=1e-5))
    ref2 = reference(x2, gamma_full, beta_full)
    assert y2.shape == x2.shape and y2.dtype == x2.dtype
    assert jnp.max(jnp.abs(y2 - ref2)) < 1e-3

    print("KERNEL_OK")
</pallas_src>

<mosaic_0001>
module attributes {stable_mosaic.version = 11 : i64} {
  func.func @_bn_kernel(%arg0: i32, %arg1: memref<512x4xf32, #tpu.memory_space<vmem>>, %arg2: memref<1x4xf32, #tpu.memory_space<vmem>>, %arg3: memref<1x4xf32, #tpu.memory_space<vmem>>, %arg4: memref<512x4xf32, #tpu.memory_space<vmem>>) attributes {dimension_semantics = [#tpu.dimension_semantics<parallel>], iteration_bounds = array<i64: 1>, scalar_prefetch = 0 : i64, scratch_operands = 0 : i64, tpu.core_type = #tpu.core_type<tc>, window_params = [{transform_indices = @transform_0, window_bounds = array<i64: 512, 4>}, {transform_indices = @transform_1, window_bounds = array<i64: 1, 4>}, {transform_indices = @transform_2, window_bounds = array<i64: 1, 4>}, {transform_indices = @transform_3, window_bounds = array<i64: 512, 4>}]} {
    %c0 = arith.constant 0 : index
    %c0_0 = arith.constant 0 : index
    %0 = vector.load %arg1[%c0, %c0_0] : memref<512x4xf32, #tpu.memory_space<vmem>>, vector<512x4xf32>
    %cst = arith.constant dense<0.000000e+00> : vector<4xf32>
    %1 = vector.multi_reduction <add>, %0, %cst [0] : vector<512x4xf32> to vector<4xf32>
    %2 = vector.shape_cast %1 : vector<4xf32> to vector<1x4xf32>
    %3 = arith.mulf %0, %0 : vector<512x4xf32>
    %cst_1 = arith.constant dense<0.000000e+00> : vector<4xf32>
    %4 = vector.multi_reduction <add>, %3, %cst_1 [0] : vector<512x4xf32> to vector<4xf32>
    %5 = vector.shape_cast %4 : vector<4xf32> to vector<1x4xf32>
    %cst_2 = arith.constant 0.001953125 : f32
    %6 = vector.broadcast %cst_2 : f32 to vector<1x4xf32>
    %7 = arith.mulf %2, %6 : vector<1x4xf32>
    %cst_3 = arith.constant 0.001953125 : f32
    %8 = vector.broadcast %cst_3 : f32 to vector<1x4xf32>
    %9 = arith.mulf %5, %8 : vector<1x4xf32>
    %10 = arith.mulf %7, %7 : vector<1x4xf32>
    %11 = arith.subf %9, %10 : vector<1x4xf32>
    %cst_4 = arith.constant 0.000000e+00 : f32
    %12 = vector.broadcast %cst_4 : f32 to vector<1x4xf32>
    %13 = arith.maximumf %11, %12 : vector<1x4xf32>
    %cst_5 = arith.constant 9.99999974E-6 : f32
    %14 = vector.broadcast %cst_5 : f32 to vector<1x4xf32>
    %15 = arith.addf %13, %14 : vector<1x4xf32>
    %16 = math.rsqrt %15 : vector<1x4xf32>
    %c0_6 = arith.constant 0 : index
    %c0_7 = arith.constant 0 : index
    %17 = vector.load %arg2[%c0_6, %c0_7] : memref<1x4xf32, #tpu.memory_space<vmem>>, vector<1x4xf32>
    %c0_8 = arith.constant 0 : index
    %c0_9 = arith.constant 0 : index
    %18 = vector.load %arg3[%c0_8, %c0_9] : memref<1x4xf32, #tpu.memory_space<vmem>>, vector<1x4xf32>
    %19 = arith.mulf %17, %16 : vector<1x4xf32>
    %20 = arith.mulf %7, %19 : vector<1x4xf32>
    %21 = arith.subf %18, %20 : vector<1x4xf32>
    %22 = vector.broadcast %19 : vector<1x4xf32> to vector<512x4xf32>
    %23 = arith.mulf %0, %22 : vector<512x4xf32>
    %24 = vector.broadcast %21 : vector<1x4xf32> to vector<512x4xf32>
    %25 = arith.addf %23, %24 : vector<512x4xf32>
    %c0_10 = arith.constant 0 : index
    %c0_11 = arith.constant 0 : index
    %26 = vector.load %arg4[%c0_10, %c0_11] : memref<512x4xf32, #tpu.memory_space<vmem>>, vector<512x4xf32>
    tpu.vector_store %arg4[%c0_10, %c0_11], %25 {strides = array<i32>} : memref<512x4xf32, #tpu.memory_space<vmem>>, vector<512x4xf32>,
    return
  }
  func.func @transform_0(%arg0: i32) -> (i32, i32) {
    %c0_i32 = arith.constant 0 : i32
    %c0_i32_0 = arith.constant 0 : i32
    return %c0_i32, %arg0 : i32, i32
  }
  func.func @transform_1(%arg0: i32) -> (i32, i32) {
    %c0_i32 = arith.constant 0 : i32
    %c0_i32_0 = arith.constant 0 : i32
    return %c0_i32, %arg0 : i32, i32
  }
  func.func @transform_2(%arg0: i32) -> (i32, i32) {
    %c0_i32 = arith.constant 0 : i32
    %c0_i32_0 = arith.constant 0 : i32
    return %c0_i32, %arg0 : i32, i32
  }
  func.func @transform_3(%arg0: i32) -> (i32, i32) {
    %c0_i32 = arith.constant 0 : i32
    %c0_i32_0 = arith.constant 0 : i32
    return %c0_i32, %arg0 : i32, i32
  }
}

</mosaic_0001>

<bundles_post_ra>
// kernel: tpu_custom_call.1
= control target key start
LH: loop header
LB: loop body
LE: loop exit
PB: predicated region body
PF: predicated region fallthrough
CT: control target
= control target key end

     0   :  { %vm78_vm0 = vcmask 31744   ;;  %s1749_s0 = inlined_call_operand.vmem [shape: f32[512,4], index: 0, kind: input, shape index: {}]   ;;  %s1750_s1 = inlined_call_operand.vmem [shape: f32[1,4], index: 1, kind: input, shape index: {}]   ;;  %s1751_s2 = inlined_call_operand.vmem [shape: f32[1,4], index: 2, kind: input, shape index: {}]   ;;  %s1752_s3 = inlined_call_operand.vmem [shape: f32[512,4], index: 3, kind: output, shape index: {}]  }
   0x1   :  { %v654_v0 = vld [vmem:[%s1749_s0] sm:$0xff]  ;;  %v659_v1 = vld [vmem:[%s1749_s0 + $0x8] sm:$0xff]  ;;  %v664_v2 = vld [vmem:[%s1749_s0 + $0x10] sm:$0xff] }
   0x2   :  { %v669_v3 = vld [vmem:[%s1749_s0 + $0x18] sm:$0xff]  ;;  %v79_v4 = vsel %vm78_vm0, %v654_v0, 0.0  ;;  %v80_v5 = vsel %vm78_vm0, %v659_v1, 0.0  ;;  %v82_v6 = vsel %vm78_vm0, %v664_v2, 0.0  ;;  %v680_v7 = vld [vmem:[%s1749_s0 + $0x20] sm:$0xff]  ;;  %v687_v10 = vld [vmem:[%s1749_s0 + $0x28] sm:$0xff]  ;;  %v212_v55 = vmul.f32 %v654_v0, %v654_v0 }
   0x3   :  { %v81_v8 = vadd.f32 %v80_v5, %v79_v4  ;;  %v84_v9 = vsel %vm78_vm0, %v669_v3, 0.0  ;;  %v86_v12 = vsel %vm78_vm0, %v680_v7, 0.0  ;;  %v694_v13 = vld [vmem:[%s1749_s0 + $0x30] sm:$0xff]  ;;  %v88_v15 = vsel %vm78_vm0, %v687_v10, 0.0  ;;  %v701_v16 = vld [vmem:[%s1749_s0 + $0x38] sm:$0xff]  ;;  %v708_v19 = vld [vmem:[%s1749_s0 + $0x40] sm:$0xff] }
   0x4   :  { %v90_v18 = vsel %vm78_vm0, %v694_v13, 0.0  ;;  %v92_v21 = vsel %vm78_vm0, %v701_v16, 0.0  ;;  %v715_v22 = vld [vmem:[%s1749_s0 + $0x48] sm:$0xff]  ;;  %v94_v24 = vsel %vm78_vm0, %v708_v19, 0.0  ;;  %v722_v25 = vld [vmem:[%s1749_s0 + $0x50] sm:$0xff]  ;;  %v729_v28 = vld [vmem:[%s1749_s0 + $0x58] sm:$0xff]  ;;  %v213_v56 = vmul.f32 %v659_v1, %v659_v1 }
   0x5   :  { %v83_v11 = vadd.f32 %v82_v6, %v81_v8  ;;  %v96_v27 = vsel %vm78_vm0, %v715_v22, 0.0  ;;  %v98_v30 = vsel %vm78_vm0, %v722_v25, 0.0  ;;  %v736_v31 = vld [vmem:[%s1749_s0 + $0x60] sm:$0xff]  ;;  %v100_v33 = vsel %vm78_vm0, %v729_v28, 0.0  ;;  %v743_v34 = vld [vmem:[%s1749_s0 + $0x68] sm:$0xff]  ;;  %v750_v37 = vld [vmem:[%s1749_s0 + $0x70] sm:$0xff] }
   0x6   :  { %v102_v36 = vsel %vm78_vm0, %v736_v31, 0.0  ;;  %v104_v39 = vsel %vm78_vm0, %v743_v34, 0.0  ;;  %v757_v40 = vld [vmem:[%s1749_s0 + $0x78] sm:$0xff]  ;;  %v106_v42 = vsel %vm78_vm0, %v750_v37, 0.0  ;;  %v764_v43 = vld [vmem:[%s1749_s0 + $0x80] sm:$0xff]  ;;  %v771_v46 = vld [vmem:[%s1749_s0 + $0x88] sm:$0xff]  ;;  %v214_v59 = vmul.f32 %v664_v2, %v664_v2 }
   0x7   :  { %v85_v14 = vadd.f32 %v84_v9, %v83_v11  ;;  %v108_v45 = vsel %vm78_vm0, %v757_v40, 0.0  ;;  %v110_v48 = vsel %vm78_vm0, %v764_v43, 0.0  ;;  %v778_v49 = vld [vmem:[%s1749_s0 + $0x90] sm:$0xff]  ;;  %v112_v51 = vsel %vm78_vm0, %v771_v46, 0.0  ;;  %v785_v52 = vld [vmem:[%s1749_s0 + $0x98] sm:$0xff]  ;;  %v796_v57 = vld [vmem:[%s1749_s0 + $0xa0] sm:$0xff] }
   0x8   :  { %v114_v54 = vsel %vm78_vm0, %v778_v49, 0.0  ;;  %v116_v60 = vsel %vm78_vm0, %v785_v52, 0.0  ;;  %v215_v61 = vmul.f32 %v669_v3, %v669_v3  ;;  %v807_v62 = vld [vmem:[%s1749_s0 + $0xa8] sm:$0xff]  ;;  %v118_v4 = vsel %vm78_vm0, %v796_v57, 0.0  ;;  %v818_v9 = vld [vmem:[%s1749_s0 + $0xb0] sm:$0xff] }
   0x9   :  { %v87_v17 = vadd.f32 %v86_v12, %v85_v14  ;;  %v216_v5 = vmul.f32 %v680_v7, %v680_v7  ;;  %v276_v6 = vsel %vm78_vm0, %v212_v55, 0.0  ;;  %v277_v8 = vsel %vm78_vm0, %v213_v56, 0.0  ;;  %v869_v55 = vld [vmem:[%s1749_s0 + $0xd8] sm:$0xff] }
   0xa   :  { %v278_v12 = vadd.f32 %v277_v8, %v276_v6  ;;  %v279_v14 = vsel %vm78_vm0, %v214_v59, 0.0  ;;  %v132_v6 = vsel %vm78_vm0, %v869_v55, 0.0  ;;  %v223_v8 = vmul.f32 %v729_v28, %v729_v28 }
   0xb   :  { %v89_v20 = vadd.f32 %v88_v15, %v87_v17  ;;  %v120_v15 = vsel %vm78_vm0, %v807_v62, 0.0  ;;  %v217_v17 = vmul.f32 %v687_v10, %v687_v10 }
   0xd   :  { %v91_v23 = vadd.f32 %v90_v18, %v89_v20  ;;  %v281_v18 = vsel %vm78_vm0, %v215_v61, 0.0  ;;  %v829_v20 = vld [vmem:[%s1749_s0 + $0xb8] sm:$0xff] }
   0xf   :  { %v93_v26 = vadd.f32 %v92_v21, %v91_v23  ;;  %v280_v23 = vadd.f32 %v279_v14, %v278_v12  ;;  %v889_v12 = vld [vmem:[%s1749_s0 + $0xe8] sm:$0xff] }
  0x10   :  { %1779 = vst [vmem:[#allocation3_spill] sm:$0xff] %v889_v12 }
  0x11   :  { %v95_v29 = vadd.f32 %v94_v24, %v93_v26  ;;  %v122_v24 = vsel %vm78_vm0, %v818_v9, 0.0  ;;  %v218_v26 = vmul.f32 %v694_v13, %v694_v13 }
  0x13   :  { %v97_v32 = vadd.f32 %v96_v27, %v95_v29  ;;  %v283_v27 = vsel %vm78_vm0, %v216_v5, 0.0  ;;  %v839_v29 = vld [vmem:[%s1749_s0 + $0xc0] sm:$0xff] }
  0x15   :  { %v99_v35 = vadd.f32 %v98_v30, %v97_v32  ;;  %v282_v32 = vadd.f32 %v281_v18, %v280_v23  ;;  %v224_v18 = vmul.f32 %v736_v31, %v736_v31  ;;  %v899_v23 = vld [vmem:[%s1749_s0 + $0xf0] sm:$0xff] }
  0x16   :  { %1780 = vst [vmem:[#allocation4_spill] sm:$0xff] %v899_v23 }
  0x17   :  { %v101_v38 = vadd.f32 %v100_v33, %v99_v35  ;;  %v124_v33 = vsel %vm78_vm0, %v829_v20, 0.0  ;;  %v219_v35 = vmul.f32 %v701_v16, %v701_v16 }
  0x19   :  { %v103_v41 = vadd.f32 %v102_v36, %v101_v38  ;;  %v285_v36 = vsel %vm78_vm0, %v217_v17, 0.0  ;;  %v849_v38 = vld [vmem:[%s1749_s0 + $0xc8] sm:$0xff] }
  0x1b   :  { %v105_v44 = vadd.f32 %v104_v39, %v103_v41  ;;  %v284_v41 = vadd.f32 %v283_v27, %v282_v32  ;;  %v136_v27 = vsel %vm78_vm0, %v889_v12, 0.0  ;;  %v297_v32 = vsel %vm78_vm0, %v223_v8, 0.0 }
  0x1d   :  { %v107_v47 = vadd.f32 %v106_v42, %v105_v44  ;;  %v126_v42 = vsel %vm78_vm0, %v839_v29, 0.0  ;;  %v220_v44 = vmul.f32 %v708_v19, %v708_v19 }
  0x1f   :  { %v109_v50 = vadd.f32 %v108_v45, %v107_v47  ;;  %v287_v45 = vsel %vm78_vm0, %v218_v26, 0.0  ;;  %v859_v47 = vld [vmem:[%s1749_s0 + $0xd0] sm:$0xff]  ;;  %v291_v61 = vsel %vm78_vm0, %v220_v44, 0.0  ;;  %v919_v44 = vld [vmem:[%s1749_s0 + $0x100] sm:$0xff] }
  0x20   :  { %v130_v59 = vsel %vm78_vm0, %v859_v47, 0.0  ;;  %1782 = vst [vmem:[#allocation6_spill] sm:$0xff] %v919_v44 }
  0x21   :  { %v111_v53 = vadd.f32 %v110_v48, %v109_v50  ;;  %v286_v50 = vadd.f32 %v285_v36, %v284_v41  ;;  %v226_v41 = vmul.f32 %v750_v37, %v750_v37 }
  0x23   :  { %v113_v58 = vadd.f32 %v112_v51, %v111_v53  ;;  %v128_v51 = vsel %vm78_vm0, %v849_v38, 0.0  ;;  %v221_v53 = vmul.f32 %v715_v22, %v715_v22 }
  0x25   :  { %v115_v63 = vadd.f32 %v114_v54, %v113_v58  ;;  %v289_v54 = vsel %vm78_vm0, %v219_v35, 0.0  ;;  %v288_v58 = vadd.f32 %v287_v45, %v286_v50 }
  0x27   :  { %v117_v11 = vadd.f32 %v116_v60, %v115_v63  ;;  %v222_v60 = vmul.f32 %v722_v25, %v722_v25  ;;  %v879_v63 = vld [vmem:[%s1749_s0 + $0xe0] sm:$0xff]  ;;  %v290_v5 = vadd.f32 %v289_v54, %v288_v58  ;;  %v929_v54 = vld [vmem:[%s1749_s0 + $0x108] sm:$0xff] }
  0x28   :  { %1778 = vst [vmem:[#allocation2_spill] sm:$0xff] %v879_v63  ;;  %v134_v17 = vsel %vm78_vm0, %v879_v63, 0.0  ;;  %1783 = vst [vmem:[#allocation7_spill] sm:$0xff] %v929_v54  ;;  %v144_v8 = vsel %vm78_vm0, %v929_v54, 0.0 }
  0x29   :  { %v119_v21 = vadd.f32 %v118_v4, %v117_v11  ;;  %v293_v11 = vsel %vm78_vm0, %v221_v53, 0.0 }
  0x2b   :  { %v121_v30 = vadd.f32 %v120_v15, %v119_v21  ;;  %v292_v15 = vadd.f32 %v291_v61, %v290_v5  ;;  %v295_v21 = vsel %vm78_vm0, %v222_v60, 0.0  ;;  %v228_v60 = vmul.f32 %v764_v43, %v764_v43 }
  0x2c   :  { %v303_v61 = vsel %vm78_vm0, %v226_v41, 0.0  ;;  %v969_v41 = vld [vmem:[%s1749_s0 + $0x128] sm:$0xff] }
  0x2d   :  { %v123_v39 = vadd.f32 %v122_v24, %v121_v30  ;;  %v294_v26 = vadd.f32 %v293_v11, %v292_v15  ;;  %v225_v30 = vmul.f32 %v743_v34, %v743_v34  ;;  %v229_v11 = vmul.f32 %v771_v46, %v771_v46  ;;  %v949_v15 = vld [vmem:[%s1749_s0 + $0x118] sm:$0xff]  ;;  %1787 = vst [vmem:[#allocation11_spill] sm:$0xff] %v969_v41 }
  0x2e   :  { %1785 = vst [vmem:[#allocation9_spill] sm:$0xff] %v949_v15 }
  0x2f   :  { %v125_v48 = vadd.f32 %v124_v33, %v123_v39  ;;  %v909_v33 = vld [vmem:[%s1749_s0 + $0xf8] sm:$0xff]  ;;  %v296_v36 = vadd.f32 %v295_v21, %v294_v26  ;;  %v138_v39 = vsel %vm78_vm0, %v899_v23, 0.0  ;;  %v301_v53 = vsel %vm78_vm0, %v225_v30, 0.0 }
  0x30   :  { %1781 = vst [vmem:[#allocation5_spill] sm:$0xff] %v909_v33  ;;  %v140_v50 = vsel %vm78_vm0, %v909_v33, 0.0  ;;  %v307_v26 = vsel %vm78_vm0, %v228_v60, 0.0  ;;  %v233_v60 = vmul.f32 %v807_v62, %v807_v62 }
  0x31   :  { %v127_v56 = vadd.f32 %v126_v42, %v125_v48  ;;  %v299_v42 = vsel %vm78_vm0, %v224_v18, 0.0  ;;  %v298_v48 = vadd.f32 %v297_v32, %v296_v36  ;;  %v231_v36 = vmul.f32 %v785_v52, %v785_v52 }
  0x33   :  { %v129_v4 = vadd.f32 %v128_v51, %v127_v56  ;;  %v227_v51 = vmul.f32 %v757_v40, %v757_v40  ;;  %v300_v58 = vadd.f32 %v299_v42, %v298_v48 }
  0x35   :  { %v131_v14 = vadd.f32 %v130_v59, %v129_v4  ;;  %v142_v59 = vsel %vm78_vm0, %v919_v44, 0.0  ;;  %v939_v4 = vld [vmem:[%s1749_s0 + $0x110] sm:$0xff] }
  0x36   :  { %1784 = vst [vmem:[#allocation8_spill] sm:$0xff] %v939_v4  ;;  %v146_v21 = vsel %vm78_vm0, %v939_v4, 0.0 }
  0x37   :  { %v133_v24 = vadd.f32 %v132_v6, %v131_v14  ;;  %v302_v6 = vadd.f32 %v301_v53, %v300_v58  ;;  %v305_v14 = vsel %vm78_vm0, %v227_v51, 0.0  ;;  %v979_v53 = vld [vmem:[%s1749_s0 + $0x130] sm:$0xff] }
  0x39   :  { %v135_v35 = vadd.f32 %v134_v17, %v133_v24  ;;  %v304_v18 = vadd.f32 %v303_v61, %v302_v6  ;;  %v230_v24 = vmul.f32 %v778_v49, %v778_v49  ;;  %v313_v61 = vsel %vm78_vm0, %v231_v36, 0.0 }
  0x3b   :  { %v137_v45 = vadd.f32 %v136_v27, %v135_v35  ;;  %v959_v27 = vld [vmem:[%s1749_s0 + $0x120] sm:$0xff]  ;;  %v306_v32 = vadd.f32 %v305_v14, %v304_v18  ;;  %v148_v35 = vsel %vm78_vm0, %v949_v15, 0.0  ;;  %v311_v51 = vsel %vm78_vm0, %v230_v24, 0.0 }
  0x3c   :  { %1786 = vst [vmem:[#allocation10_spill] sm:$0xff] %v959_v27  ;;  %v150_v48 = vsel %vm78_vm0, %v959_v27, 0.0  ;;  %v234_v14 = vmul.f32 %v818_v9, %v818_v9  ;;  %v999_v18 = vld [vmem:[%s1749_s0 + $0x140] sm:$0xff] }
  0x3d   :  { %v139_v56 = vadd.f32 %v138_v39, %v137_v45  ;;  %v309_v39 = vsel %vm78_vm0, %v229_v11, 0.0  ;;  %v308_v45 = vadd.f32 %v307_v26, %v306_v32  ;;  %v154_v11 = vsel %vm78_vm0, %v979_v53, 0.0 }
  0x3e   :  { %v317_v32 = vsel %vm78_vm0, %v233_v60, 0.0 }
  0x3f   :  { %v141_v5 = vadd.f32 %v140_v50, %v139_v56  ;;  %v232_v50 = vmul.f32 %v796_v57, %v796_v57  ;;  %v310_v58 = vadd.f32 %v309_v39, %v308_v45  ;;  %v236_v45 = vmul.f32 %v839_v29, %v839_v29 }
  0x41   :  { %v143_v17 = vadd.f32 %v142_v59, %v141_v5  ;;  %v152_v59 = vsel %vm78_vm0, %v969_v41, 0.0  ;;  %v989_v5 = vld [vmem:[%s1749_s0 + $0x138] sm:$0xff] }
  0x42   :  { %v156_v26 = vsel %vm78_vm0, %v989_v5, 0.0 }
  0x43   :  { %v145_v30 = vadd.f32 %v144_v8, %v143_v17  ;;  %v312_v8 = vadd.f32 %v311_v51, %v310_v58  ;;  %v315_v17 = vsel %vm78_vm0, %v232_v50, 0.0  ;;  %v1019_v50 = vld [vmem:[%s1749_s0 + $0x150] sm:$0xff] }
  0x45   :  { %v147_v42 = vadd.f32 %v146_v21, %v145_v30  ;;  %v314_v24 = vadd.f32 %v313_v61, %v312_v8  ;;  %v235_v30 = vmul.f32 %v829_v20, %v829_v20  ;;  %v1029_v61 = vld [vmem:[%s1749_s0 + $0x158] sm:$0xff] }
  0x46   :  { %1788 = vst [vmem:[#allocation12_spill] sm:$0xff] %v1029_v61 }
  0x47   :  { %v149_v56 = vadd.f32 %v148_v35, %v147_v42  ;;  %v1009_v35 = vld [vmem:[%s1749_s0 + $0x148] sm:$0xff]  ;;  %v316_v39 = vadd.f32 %v315_v17, %v314_v24  ;;  %v158_v42 = vsel %vm78_vm0, %v999_v18, 0.0  ;;  %v321_v60 = vsel %vm78_vm0, %v235_v30, 0.0 }
  0x48   :  { %v160_v58 = vsel %vm78_vm0, %v1009_v35, 0.0  ;;  %v323_v17 = vsel %vm78_vm0, %v236_v45, 0.0  ;;  %v164_v30 = vsel %vm78_vm0, %v1029_v61, 0.0 }
  0x49   :  { %v151_v6 = vadd.f32 %v150_v48, %v149_v56  ;;  %v319_v48 = vsel %vm78_vm0, %v234_v14, 0.0  ;;  %v318_v56 = vadd.f32 %v317_v32, %v316_v39  ;;  %v238_v14 = vmul.f32 %v859_v47, %v859_v47  ;;  %v1049_v39 = vld [vmem:[%s1749_s0 + $0x168] sm:$0xff] }
  0x4a   :  { %v239_v32 = vmul.f32 %v869_v55, %v869_v55  ;;  %1789 = vst [vmem:[#allocation13_spill] sm:$0xff] %v1049_v39 }
  0x4b   :  { %v153_v21 = vadd.f32 %v152_v59, %v151_v6  ;;  %v237_v59 = vmul.f32 %v849_v38, %v849_v38  ;;  %v320_v8 = vadd.f32 %v319_v48, %v318_v56  ;;  %v327_v56 = vsel %vm78_vm0, %v238_v14, 0.0 }
  0x4d   :  { %v155_v36 = vadd.f32 %v154_v11, %v153_v21  ;;  %v162_v11 = vsel %vm78_vm0, %v1019_v50, 0.0  ;;  %v1039_v21 = vld [vmem:[%s1749_s0 + $0x160] sm:$0xff] }
  0x4e   :  { %v166_v48 = vsel %vm78_vm0, %v1039_v21, 0.0 }
  0x4f   :  { %v157_v51 = vadd.f32 %v156_v26, %v155_v36  ;;  %v322_v26 = vadd.f32 %v321_v60, %v320_v8  ;;  %v325_v36 = vsel %vm78_vm0, %v237_v59, 0.0  ;;  %v241_v8 = vmul.f32 %v889_v12, %v889_v12 }
  0x51   :  { %v159_v6 = vadd.f32 %v158_v42, %v157_v51  ;;  %v324_v45 = vadd.f32 %v323_v17, %v322_v26  ;;  %v240_v51 = vmul.f32 %v879_v63, %v879_v63  ;;  %v1069_v17 = vld [vmem:[%s1749_s0 + $0x178] sm:$0xff] }
  0x52   :  { %1790 = vst [vmem:[#allocation14_spill] sm:$0xff] %v1069_v17  ;;  %v172_v12 = vsel %vm78_vm0, %v1069_v17, 0.0 }
  0x53   :  { %v161_v24 = vadd.f32 %v160_v58, %v159_v6  ;;  %v1059_v58 = vld [vmem:[%s1749_s0 + $0x170] sm:$0xff]  ;;  %v326_v60 = vadd.f32 %v325_v36, %v324_v45  ;;  %v168_v6 = vsel %vm78_vm0, %v1049_v39, 0.0  ;;  %v331_v36 = vsel %vm78_vm0, %v240_v51, 0.0 }
  0x54   :  { %v170_v26 = vsel %vm78_vm0, %v1059_v58, 0.0 }
  0x55   :  { %v163_v42 = vadd.f32 %v162_v11, %v161_v24  ;;  %v329_v11 = vsel %vm78_vm0, %v239_v32, 0.0  ;;  %v328_v24 = vadd.f32 %v327_v56, %v326_v60  ;;  %v333_v56 = vsel %vm78_vm0, %v241_v8, 0.0 }
  0x57   :  { %v165_v59 = vadd.f32 %v164_v30, %v163_v42  ;;  %v242_v30 = vmul.f32 %v899_v23, %v899_v23  ;;  %v1079_v42 = vld [vmem:[%s1749_s0 + $0x180] sm:$0xff]  ;;  %v330_v45 = vadd.f32 %v329_v11, %v328_v24 }
  0x58   :  { %v174_v23 = vsel %vm78_vm0, %v1079_v42, 0.0 }
  0x59   :  { %v167_v14 = vadd.f32 %v166_v48, %v165_v59  ;;  %v243_v48 = vmul.f32 %v909_v33, %v909_v33  ;;  %v1089_v59 = vld [vmem:[%s1749_s0 + $0x188] sm:$0xff]  ;;  %v332_v60 = vadd.f32 %v331_v36, %v330_v45  ;;  %v335_v11 = vsel %vm78_vm0, %v242_v30, 0.0 }
  0x5a   :  { %1791 = vst [vmem:[#allocation15_spill] sm:$0xff] %v1089_v59  ;;  %v176_v33 = vsel %vm78_vm0, %v1089_v59, 0.0 }
  0x5b   :  { %v169_v32 = vadd.f32 %v168_v6, %v167_v14  ;;  %v244_v6 = vmul.f32 %v919_v44, %v919_v44  ;;  %v1099_v14 = vld [vmem:[%s1749_s0 + $0x190] sm:$0xff]  ;;  %v334_v24 = vadd.f32 %v333_v56, %v332_v60  ;;  %v337_v36 = vsel %vm78_vm0, %v243_v48, 0.0 }
  0x5c   :  { %v178_v44 = vsel %vm78_vm0, %v1099_v14, 0.0 }
  0x5d   :  { %v171_v51 = vadd.f32 %v170_v26, %v169_v32  ;;  %v245_v26 = vmul.f32 %v929_v54, %v929_v54  ;;  %v1109_v32 = vld [vmem:[%s1749_s0 + $0x198] sm:$0xff]  ;;  %v336_v45 = vadd.f32 %v335_v11, %v334_v24  ;;  %v339_v56 = vsel %vm78_vm0, %v244_v6, 0.0 }
  0x5e   :  { %1792 = vst [vmem:[#allocation16_spill] sm:$0xff] %v1109_v32  ;;  %v180_v54 = vsel %vm78_vm0, %v1109_v32, 0.0 }
  0x5f   :  { %v173_v8 = vadd.f32 %v172_v12, %v171_v51  ;;  %v246_v12 = vmul.f32 %v939_v4, %v939_v4  ;;  %v1119_v51 = vld [vmem:[%s1749_s0 + $0x1a0] sm:$0xff]  ;;  %v338_v60 = vadd.f32 %v337_v36, %v336_v45  ;;  %v341_v11 = vsel %vm78_vm0, %v245_v26, 0.0 }
  0x60   :  { %1793 = vst [vmem:[#allocation17_spill] sm:$0xff] %v1119_v51  ;;  %v182_v4 = vsel %vm78_vm0, %v1119_v51, 0.0 }
  0x61   :  { %v175_v30 = vadd.f32 %v174_v23, %v173_v8  ;;  %v247_v23 = vmul.f32 %v949_v15, %v949_v15  ;;  %v1129_v8 = vld [vmem:[%s1749_s0 + $0x1a8] sm:$0xff]  ;;  %v340_v24 = vadd.f32 %v339_v56, %v338_v60  ;;  %v343_v36 = vsel %vm78_vm0, %v246_v12, 0.0 }
  0x62   :  { %1794 = vst [vmem:[#allocation18_spill] sm:$0xff] %v1129_v8  ;;  %v184_v15 = vsel %vm78_vm0, %v1129_v8, 0.0 }
  0x63   :  { %v177_v48 = vadd.f32 %v176_v33, %v175_v30  ;;  %v248_v33 = vmul.f32 %v959_v27, %v959_v27  ;;  %v1139_v30 = vld [vmem:[%s1749_s0 + $0x1b0] sm:$0xff]  ;;  %v342_v45 = vadd.f32 %v341_v11, %v340_v24  ;;  %v345_v56 = vsel %vm78_vm0, %v247_v23, 0.0 }
  0x64   :  { %1795 = vst [vmem:[#allocation19_spill] sm:$0xff] %v1139_v30  ;;  %v186_v27 = vsel %vm78_vm0, %v1139_v30, 0.0 }
  0x65   :  { %v179_v6 = vadd.f32 %v178_v44, %v177_v48  ;;  %v249_v44 = vmul.f32 %v969_v41, %v969_v41  ;;  %v1149_v48 = vld [vmem:[%s1749_s0 + $0x1b8] sm:$0xff]  ;;  %v344_v60 = vadd.f32 %v343_v36, %v342_v45  ;;  %v347_v11 = vsel %vm78_vm0, %v248_v33, 0.0 }
  0x66   :  { %v188_v23 = vsel %vm78_vm0, %v1149_v48, 0.0  ;;  %v251_v41 = vmul.f32 %v989_v5, %v989_v5  ;;  %v252_v33 = vmul.f32 %v999_v18, %v999_v18 }
  0x67   :  { %v181_v26 = vadd.f32 %v180_v54, %v179_v6  ;;  %v250_v54 = vmul.f32 %v979_v53, %v979_v53  ;;  %v346_v24 = vadd.f32 %v345_v56, %v344_v60  ;;  %v349_v63 = vsel %vm78_vm0, %v249_v44, 0.0 }
  0x68   :  { %v253_v44 = vmul.f32 %v1009_v35, %v1009_v35  ;;  %v353_v60 = vsel %vm78_vm0, %v251_v41, 0.0 }
  0x69   :  { %v183_v12 = vadd.f32 %v182_v4, %v181_v26  ;;  %v1164_v4 = vld [vmem:[%s1749_s0 + $0x1c0] sm:$0xff]  ;;  %v348_v26 = vadd.f32 %v347_v11, %v346_v24 }
  0x6a   :  { %v357_v41 = vsel %vm78_vm0, %v253_v44, 0.0 }
  0x6b   :  { %v185_v6 = vadd.f32 %v184_v15, %v183_v12  ;;  %v351_v15 = vsel %vm78_vm0, %v250_v54, 0.0  ;;  %v350_v56 = vadd.f32 %v349_v63, %v348_v26  ;;  %v190_v12 = vsel %vm78_vm0, %v1164_v4, 0.0  ;;  %v1190_v26 = vld [vmem:[%s1749_s0 + $0x1d0] sm:$0xff] }
  0x6c   :  { %v355_v54 = vsel %vm78_vm0, %v252_v33, 0.0  ;;  %1797 = vst [vmem:[#allocation21_spill] sm:$0xff] %v1190_v26 }
  0x6d   :  { %v187_v36 = vadd.f32 %v186_v27, %v185_v6  ;;  %v1177_v27 = vld [vmem:[%s1749_s0 + $0x1c8] sm:$0xff]  ;;  %v352_v11 = vadd.f32 %v351_v15, %v350_v56  ;;  %v254_v6 = vmul.f32 %v1019_v50, %v1019_v50  ;;  %v256_v56 = vmul.f32 %v1039_v21, %v1039_v21 }
  0x6e   :  { %1796 = vst [vmem:[#allocation20_spill] sm:$0xff] %v1177_v27 }
  0x6f   :  { %v189_v45 = vadd.f32 %v188_v23, %v187_v36  ;;  %v354_v24 = vadd.f32 %v353_v60, %v352_v11  ;;  %v192_v23 = vsel %vm78_vm0, %v1177_v27, 0.0  ;;  %v255_v36 = vmul.f32 %v1029_v61, %v1029_v61  ;;  %v1203_v61 = vld [vmem:[%s1749_s0 + $0x1d8] sm:$0xff] }
  0x70   :  { %v359_v33 = vsel %vm78_vm0, %v254_v6, 0.0  ;;  %v194_v60 = vsel %vm78_vm0, %v1190_v26, 0.0  ;;  %v257_v11 = vmul.f32 %v1049_v39, %v1049_v39  ;;  %1798 = vst [vmem:[#allocation22_spill] sm:$0xff] %v1203_v61  ;;  %v363_v6 = vsel %vm78_vm0, %v256_v56, 0.0  ;;  %v1216_v39 = vld [vmem:[%s1749_s0 + $0x1e0] sm:$0xff] }
  0x71   :  { %v191_v63 = vadd.f32 %v190_v12, %v189_v45  ;;  %v356_v15 = vadd.f32 %v355_v54, %v354_v24  ;;  %v361_v44 = vsel %vm78_vm0, %v255_v36, 0.0  ;;  %v258_v24 = vmul.f32 %v1059_v58, %v1059_v58  ;;  %1799 = vst [vmem:[#allocation23_spill] sm:$0xff] %v1216_v39 }
  0x72   :  { %v365_v36 = vsel %vm78_vm0, %v257_v11, 0.0 }
  0x73   :  { %v193_v45 = vadd.f32 %v192_v23, %v191_v63  ;;  %v358_v12 = vadd.f32 %v357_v41, %v356_v15  ;;  %v196_v41 = vsel %vm78_vm0, %v1203_v61, 0.0  ;;  %v259_v15 = vmul.f32 %v1069_v17, %v1069_v17  ;;  %v1229_v17 = vld [vmem:[%s1749_s0 + $0x1e8] sm:$0xff] }
  0x74   :  { %v367_v56 = vsel %vm78_vm0, %v258_v24, 0.0  ;;  %1800 = vst [vmem:[#allocation24_spill] sm:$0xff] %v1229_v17 }
  0x75   :  { %v360_v54 = vadd.f32 %v359_v33, %v358_v12  ;;  %v195_v63 = vadd.f32 %v194_v60, %v193_v45  ;;  %v260_v12 = vmul.f32 %v1079_v42, %v1079_v42  ;;  %v369_v11 = vsel %vm78_vm0, %v259_v15, 0.0 }
  0x77   :  { %v362_v23 = vadd.f32 %v361_v44, %v360_v54  ;;  %v197_v45 = vadd.f32 %v196_v41, %v195_v63  ;;  %v198_v44 = vsel %vm78_vm0, %v1216_v39, 0.0  ;;  %v261_v54 = vmul.f32 %v1089_v59, %v1089_v59  ;;  %v1242_v59 = vld [vmem:[%s1749_s0 + $0x1f0] sm:$0xff] }
  0x78   :  { %v371_v24 = vsel %vm78_vm0, %v260_v12, 0.0  ;;  %1801 = vst [vmem:[#allocation25_spill] sm:$0xff] %v1242_v59 }
  0x79   :  { %v364_v33 = vadd.f32 %v363_v6, %v362_v23  ;;  %v262_v23 = vmul.f32 %v1099_v14, %v1099_v14  ;;  %v199_v63 = vadd.f32 %v198_v44, %v197_v45  ;;  %v373_v15 = vsel %vm78_vm0, %v261_v54, 0.0 }
  0x7b   :  { %v366_v60 = vadd.f32 %v365_v36, %v364_v33  ;;  %v200_v36 = vsel %vm78_vm0, %v1229_v17, 0.0  ;;  %v263_v33 = vmul.f32 %v1109_v32, %v1109_v32  ;;  %v375_v12 = vsel %vm78_vm0, %v262_v23, 0.0  ;;  %v1255_v32 = vld [vmem:[%s1749_s0 + $0x1f8] sm:$0xff] }
  0x7c   :  { %v201_v45 = vadd.f32 %v200_v36, %v199_v63  ;;  %1802 = vst [vmem:[#allocation26_spill] sm:$0xff] %v1255_v32 }
  0x7d   :  { %v368_v6 = vadd.f32 %v367_v56, %v366_v60  ;;  %v264_v60 = vmul.f32 %v1119_v51, %v1119_v51  ;;  %v377_v54 = vsel %vm78_vm0, %v263_v33, 0.0  ;;  %v268_v51 = vmul.f32 %v1164_v4, %v1164_v4 }
  0x7f   :  { %v370_v41 = vadd.f32 %v369_v11, %v368_v6  ;;  %v202_v11 = vsel %vm78_vm0, %v1242_v59, 0.0  ;;  %v265_v6 = vmul.f32 %v1129_v8, %v1129_v8  ;;  %v379_v23 = vsel %vm78_vm0, %v264_v60, 0.0 }
  0x80   :  { %v203_v63 = vadd.f32 %v202_v11, %v201_v45  ;;  %v269_v60 = vmul.f32 %v1177_v27, %v1177_v27 }
  0x81   :  { %v372_v56 = vadd.f32 %v371_v24, %v370_v41  ;;  %v266_v41 = vmul.f32 %v1139_v30, %v1139_v30  ;;  %v381_v33 = vsel %vm78_vm0, %v265_v6, 0.0 }
  0x83   :  { %v374_v44 = vadd.f32 %v373_v15, %v372_v56  ;;  %v204_v15 = vsel %vm78_vm0, %v1255_v32, 0.0  ;;  %v267_v56 = vmul.f32 %v1149_v48, %v1149_v48 }
  0x85   :  { %v376_v24 = vadd.f32 %v375_v12, %v374_v44  ;;  %v383_v12 = vsel %vm78_vm0, %v266_v41, 0.0  ;;  %v205_v44 = vadd.f32 %v204_v15, %v203_v63  ;;  %v385_v45 = vsel %vm78_vm0, %v267_v56, 0.0 }
  0x86   :  { %v389_v41 = vsel %vm78_vm0, %v269_v60, 0.0 }
  0x87   :  { %v378_v36 = vadd.f32 %v377_v54, %v376_v24  ;;  %v270_v54 = vmul.f32 %v1190_v26, %v1190_v26  ;;  %v387_v24 = vsel %vm78_vm0, %v268_v51, 0.0  ;;  %v206_v6 = vrot.slane %v205_v44, 4 }
  0x89   :  { %v380_v8 = vadd.f32 %v379_v23, %v378_v36  ;;  %v271_v36 = vmul.f32 %v1203_v61, %v1203_v61  ;;  %v391_v15 = vsel %vm78_vm0, %v270_v54, 0.0  ;;  %v207_v56 = vadd.f32 %v206_v6, %v205_v44 }
  0x8b   :  { %v382_v30 = vadd.f32 %v381_v33, %v380_v8  ;;  %v272_v8 = vmul.f32 %v1216_v39, %v1216_v39  ;;  %v273_v33 = vmul.f32 %v1229_v17, %v1229_v17  ;;  %v393_v51 = vsel %vm78_vm0, %v271_v36, 0.0 }
  0x8c   :  { %v208_v60 = vrot.slane %v207_v56, 2 }
  0x8d   :  { %v384_v11 = vadd.f32 %v383_v12, %v382_v30  ;;  %v397_v54 = vsel %vm78_vm0, %v273_v33, 0.0 }
  0x8f   :  { %v386_v23 = vadd.f32 %v385_v45, %v384_v11  ;;  %v274_v45 = vmul.f32 %v1242_v59, %v1242_v59  ;;  %v395_v11 = vsel %vm78_vm0, %v272_v8, 0.0 }
  0x91   :  { %v388_v63 = vadd.f32 %v387_v24, %v386_v23  ;;  %v275_v23 = vmul.f32 %v1255_v32, %v1255_v32  ;;  %v399_v6 = vsel %vm78_vm0, %v274_v45, 0.0 }
  0x93   :  { %v390_v30 = vadd.f32 %v389_v41, %v388_v63  ;;  %v209_v41 = vadd.f32 %v208_v60, %v207_v56  ;;  %v401_v36 = vsel %vm78_vm0, %v275_v23, 0.0  ;;  %v422_v56 = vlaneseq  ;;  %v416_v23 = vld [vmem:[%s1750_s1] sm:$0x1] }
  0x95   :  { %v392_v12 = vadd.f32 %v391_v15, %v390_v30  ;;  %v210_v30 = vrot.slane %v209_v41, 1  ;;  %v423_v60 = vshrl.u32 %v422_v56, 7 }
  0x97   :  { %v394_v24 = vadd.f32 %v393_v51, %v392_v12  ;;  %v211_v39 = vadd.f32 %v210_v30, %v209_v41 }
  0x99   :  { %v396_v44 = vadd.f32 %v395_v11, %v394_v24  ;;  %v409_v12 = vmul.f32 0.001953125, %v211_v39 }
  0x9b   :  { %v398_v63 = vadd.f32 %v397_v54, %v396_v44  ;;  %v411_v27 = vmul.f32 %v409_v12, %v409_v12  ;;  %v424_v54 = vsub.s32 0, %v423_v60 }
  0x9d   :  { %v400_v15 = vadd.f32 %v399_v6, %v398_v63 }
  0x9f   :  { %v402_v17 = vadd.f32 %v401_v36, %v400_v15 }
  0xa1   :  { %v403_v59 = vrot.slane %v402_v17, 4 }
  0xa3   :  { %v404_v8 = vadd.f32 %v403_v59, %v402_v17 }
  0xa5   :  { %v405_v61 = vrot.slane %v404_v8, 2 }
  0xa7   :  { %v406_v51 = vadd.f32 %v405_v61, %v404_v8  ;;  %v417_v61 = vld [vmem:[%s1751_s2] sm:$0x1] }
  0xa9   :  { %v407_v26 = vrot.slane %v406_v51, 1 }
  0xab   :  { %v408_v32 = vadd.f32 %v407_v26, %v406_v51 }
  0xad   :  { %v410_v33 = vmul.f32 0.001953125, %v408_v32 }
  0xaf   :  { %v412_v11 = vsub.f32 %v410_v33, %v411_v27 }
  0xb1   :  { %v413_v24 = vmax.f32 %v412_v11, 0.0 }
  0xb3   :  { %v414_v45 = vadd.f32 1e-05, %v413_v24 }
  0xb5   :  { %629 = vrsqrt.f32 %v414_v45 }
  0xbf   :  { %v630_v44 = vpop.eup %629 }
  0xc0   :  { %v418_v17 = vmul.f32 %v630_v44, %v416_v23 }
  0xc2   :  { %v419_v39 = vmul.f32 %v418_v17, %v409_v12  ;;  %v1297_v59 = vrot.slane %v418_v17, %v424_v54 }
  0xc4   :  { %v420_v32 = vsub.f32 %v417_v61, %v419_v39  ;;  %v427_v27 = vmul.f32 %v1297_v59, %v654_v0  ;;  %v428_v26 = vmul.f32 %v1297_v59, %v659_v1  ;;  %v429_v6 = vmul.f32 %v1297_v59, %v664_v2 }
  0xc5   :  { %v430_v41 = vmul.f32 %v1297_v59, %v669_v3  ;;  %v431_v63 = vmul.f32 %v1297_v59, %v680_v7  ;;  %v432_v36 = vmul.f32 %v1297_v59, %v687_v10  ;;  %v433_v15 = vmul.f32 %v1297_v59, %v694_v13 }
  0xc6   :  { %v1313_v30 = vrot.slane %v420_v32, %v424_v54  ;;  %v434_v0 = vmul.f32 %v1297_v59, %v701_v16  ;;  %v435_v1 = vmul.f32 %v1297_v59, %v708_v19  ;;  %v436_v2 = vmul.f32 %v1297_v59, %v715_v22 }
  0xc7   :  { %v437_v3 = vmul.f32 %v1297_v59, %v722_v25  ;;  %v438_v7 = vmul.f32 %v1297_v59, %v729_v28  ;;  %v439_v10 = vmul.f32 %v1297_v59, %v736_v31  ;;  %v440_v13 = vmul.f32 %v1297_v59, %v743_v34 }
  0xc8   :  { %v497_v16 = vadd.f32 %v1313_v30, %v427_v27  ;;  %v498_v8 = vadd.f32 %v1313_v30, %v428_v26  ;;  %v499_v19 = vadd.f32 %v1313_v30, %v429_v6  ;;  %v500_v22 = vadd.f32 %v1313_v30, %v430_v41  ;;  %v1803_v41 = vld [vmem:[#allocation2_spill] sm:$0xff] }
  0xc9   :  { %v501_v51 = vadd.f32 %v1313_v30, %v431_v63  ;;  %v502_v25 = vadd.f32 %v1313_v30, %v432_v36  ;;  %v503_v28 = vadd.f32 %v1313_v30, %v433_v15  ;;  %v504_v12 = vadd.f32 %v1313_v30, %v434_v0  ;;  %v1804_v63 = vld [vmem:[#allocation3_spill] sm:$0xff] }
  0xca   :  { %561 = vst.msk [vmem:[%s1752_s3] sm:$0xff] %vm78_vm0, %v497_v16  ;;  %562 = vst.msk [vmem:[%s1752_s3 + $0x8] sm:$0xff] %vm78_vm0, %v498_v8  ;;  %v505_v31 = vadd.f32 %v1313_v30, %v435_v1  ;;  %v506_v34 = vadd.f32 %v1313_v30, %v436_v2  ;;  %v507_v33 = vadd.f32 %v1313_v30, %v437_v3  ;;  %v1807_v8 = vld [vmem:[#allocation6_spill] sm:$0xff] }
  0xcb   :  { %563 = vst.msk [vmem:[%s1752_s3 + $0x10] sm:$0xff] %vm78_vm0, %v499_v19  ;;  %564 = vst.msk [vmem:[%s1752_s3 + $0x18] sm:$0xff] %vm78_vm0, %v500_v22  ;;  %v508_v11 = vadd.f32 %v1313_v30, %v438_v7  ;;  %v509_v24 = vadd.f32 %v1313_v30, %v439_v10  ;;  %v510_v45 = vadd.f32 %v1313_v30, %v440_v13  ;;  %v1805_v7 = vld [vmem:[#allocation4_spill] sm:$0xff]  ;;  %v1806_v13 = vld [vmem:[#allocation5_spill] sm:$0xff] }
  0xcc   :  { %565 = vst.msk [vmem:[%s1752_s3 + $0x20] sm:$0xff] %vm78_vm0, %v501_v51  ;;  %566 = vst.msk [vmem:[%s1752_s3 + $0x28] sm:$0xff] %vm78_vm0, %v502_v25  ;;  %v441_v56 = vmul.f32 %v1297_v59, %v750_v37  ;;  %v442_v60 = vmul.f32 %v1297_v59, %v757_v40  ;;  %v443_v37 = vmul.f32 %v1297_v59, %v764_v43  ;;  %v1808_v22 = vld [vmem:[#allocation7_spill] sm:$0xff]  ;;  %v1809_v25 = vld [vmem:[#allocation8_spill] sm:$0xff] }
  0xcd   :  { %567 = vst.msk [vmem:[%s1752_s3 + $0x30] sm:$0xff] %vm78_vm0, %v503_v28  ;;  %568 = vst.msk [vmem:[%s1752_s3 + $0x38] sm:$0xff] %vm78_vm0, %v504_v12  ;;  %v444_v40 = vmul.f32 %v1297_v59, %v771_v46  ;;  %v445_v23 = vmul.f32 %v1297_v59, %v778_v49  ;;  %v446_v54 = vmul.f32 %v1297_v59, %v785_v52  ;;  %v1810_v12 = vld [vmem:[#allocation9_spill] sm:$0xff] }
  0xce   :  { %569 = vst.msk [vmem:[%s1752_s3 + $0x40] sm:$0xff] %vm78_vm0, %v505_v31  ;;  %570 = vst.msk [vmem:[%s1752_s3 + $0x48] sm:$0xff] %vm78_vm0, %v506_v34  ;;  %v511_v43 = vadd.f32 %v1313_v30, %v441_v56  ;;  %v512_v46 = vadd.f32 %v1313_v30, %v442_v60  ;;  %v447_v49 = vmul.f32 %v1297_v59, %v796_v57 }
  0xcf   :  { %571 = vst.msk [vmem:[%s1752_s3 + $0x50] sm:$0xff] %vm78_vm0, %v507_v33  ;;  %572 = vst.msk [vmem:[%s1752_s3 + $0x58] sm:$0xff] %vm78_vm0, %v508_v11  ;;  %v448_v52 = vmul.f32 %v1297_v59, %v807_v62  ;;  %v513_v44 = vadd.f32 %v1313_v30, %v443_v37  ;;  %v514_v17 = vadd.f32 %v1313_v30, %v444_v40  ;;  %v1811_v11 = vld [vmem:[#allocation10_spill] sm:$0xff] }
  0xd0   :  { %573 = vst.msk [vmem:[%s1752_s3 + $0x60] sm:$0xff] %vm78_vm0, %v509_v24  ;;  %574 = vst.msk [vmem:[%s1752_s3 + $0x68] sm:$0xff] %vm78_vm0, %v510_v45  ;;  %v515_v61 = vadd.f32 %v1313_v30, %v445_v23  ;;  %v516_v39 = vadd.f32 %v1313_v30, %v446_v54  ;;  %v517_v57 = vadd.f32 %v1313_v30, %v447_v49  ;;  %v1812_v45 = vld [vmem:[#allocation11_spill] sm:$0xff] }
  0xd1   :  { %575 = vst.msk [vmem:[%s1752_s3 + $0x70] sm:$0xff] %vm78_vm0, %v511_v43  ;;  %576 = vst.msk [vmem:[%s1752_s3 + $0x78] sm:$0xff] %vm78_vm0, %v512_v46  ;;  %v518_v62 = vadd.f32 %v1313_v30, %v448_v52  ;;  %v449_v32 = vmul.f32 %v1297_v59, %v818_v9  ;;  %v450_v27 = vmul.f32 %v1297_v59, %v829_v20 }
  0xd2   :  { %577 = vst.msk [vmem:[%s1752_s3 + $0x80] sm:$0xff] %vm78_vm0, %v513_v44  ;;  %578 = vst.msk [vmem:[%s1752_s3 + $0x88] sm:$0xff] %vm78_vm0, %v514_v17  ;;  %v451_v9 = vmul.f32 %v1297_v59, %v839_v29  ;;  %v452_v20 = vmul.f32 %v1297_v59, %v849_v38  ;;  %v453_v26 = vmul.f32 %v1297_v59, %v859_v47  ;;  %v1813_v44 = vld [vmem:[#allocation12_spill] sm:$0xff] }
  0xd3   :  { %579 = vst.msk [vmem:[%s1752_s3 + $0x90] sm:$0xff] %vm78_vm0, %v515_v61  ;;  %580 = vst.msk [vmem:[%s1752_s3 + $0x98] sm:$0xff] %vm78_vm0, %v516_v39  ;;  %v454_v6 = vmul.f32 %v1297_v59, %v869_v55  ;;  %v519_v29 = vadd.f32 %v1313_v30, %v449_v32  ;;  %v520_v38 = vadd.f32 %v1313_v30, %v450_v27  ;;  %v1814_v61 = vld [vmem:[#allocation13_spill] sm:$0xff] }
  0xd4   :  { %581 = vst.msk [vmem:[%s1752_s3 + $0xa0] sm:$0xff] %vm78_vm0, %v517_v57  ;;  %582 = vst.msk [vmem:[%s1752_s3 + $0xa8] sm:$0xff] %vm78_vm0, %v518_v62  ;;  %v455_v47 = vmul.f32 %v1297_v59, %v1803_v41  ;;  %v456_v55 = vmul.f32 %v1297_v59, %v1804_v63  ;;  %v521_v36 = vadd.f32 %v1313_v30, %v451_v9 }
  0xd5   :  { %v522_v15 = vadd.f32 %v1313_v30, %v452_v20  ;;  %v523_v0 = vadd.f32 %v1313_v30, %v453_v26  ;;  %v524_v1 = vadd.f32 %v1313_v30, %v454_v6  ;;  %583 = vst.msk [vmem:[%s1752_s3 + $0xb0] sm:$0xff] %vm78_vm0, %v519_v29  ;;  %584 = vst.msk [vmem:[%s1752_s3 + $0xb8] sm:$0xff] %vm78_vm0, %v520_v38  ;;  %v1815_v26 = vld [vmem:[#allocation14_spill] sm:$0xff]  ;;  %v1816_v29 = vld [vmem:[#allocation15_spill] sm:$0xff] }
  0xd6   :  { %v525_v2 = vadd.f32 %v1313_v30, %v455_v47  ;;  %v526_v3 = vadd.f32 %v1313_v30, %v456_v55  ;;  %v457_v10 = vmul.f32 %v1297_v59, %v1805_v7  ;;  %v458_v16 = vmul.f32 %v1297_v59, %v1806_v13  ;;  %585 = vst.msk [vmem:[%s1752_s3 + $0xc0] sm:$0xff] %vm78_vm0, %v521_v36  ;;  %v1817_v47 = vld [vmem:[#allocation16_spill] sm:$0xff]  ;;  %v1818_v36 = vld [vmem:[#allocation17_spill] sm:$0xff] }
  0xd7   :  { %586 = vst.msk [vmem:[%s1752_s3 + $0xc8] sm:$0xff] %vm78_vm0, %v522_v15  ;;  %587 = vst.msk [vmem:[%s1752_s3 + $0xd0] sm:$0xff] %vm78_vm0, %v523_v0  ;;  %v459_v19 = vmul.f32 %v1297_v59, %v1807_v8  ;;  %v460_v51 = vmul.f32 %v1297_v59, %v1808_v22  ;;  %v461_v28 = vmul.f32 %v1297_v59, %v1809_v25  ;;  %v1819_v15 = vld [vmem:[#allocation18_spill] sm:$0xff]  ;;  %v1821_v22 = vld [vmem:[#allocation20_spill] sm:$0xff] }
  0xd8   :  { %588 = vst.msk [vmem:[%s1752_s3 + $0xd8] sm:$0xff] %vm78_vm0, %v524_v1  ;;  %v462_v31 = vmul.f32 %v1297_v59, %v1810_v12  ;;  %589 = vst.msk [vmem:[%s1752_s3 + $0xe0] sm:$0xff] %vm78_vm0, %v525_v2  ;;  %v527_v34 = vadd.f32 %v1313_v30, %v457_v10  ;;  %v528_v33 = vadd.f32 %v1313_v30, %v458_v16  ;;  %v1820_v16 = vld [vmem:[#allocation19_spill] sm:$0xff]  ;;  %v1822_v25 = vld [vmem:[#allocation21_spill] sm:$0xff] }
  0xd9   :  { %590 = vst.msk [vmem:[%s1752_s3 + $0xe8] sm:$0xff] %vm78_vm0, %v526_v3  ;;  %v463_v24 = vmul.f32 %v1297_v59, %v1811_v11  ;;  %v464_v56 = vmul.f32 %v1297_v59, %v1812_v45  ;;  %v529_v60 = vadd.f32 %v1313_v30, %v459_v19  ;;  %v530_v37 = vadd.f32 %v1313_v30, %v460_v51  ;;  %v1823_v12 = vld [vmem:[#allocation22_spill] sm:$0xff] }
  0xda   :  { %v531_v40 = vadd.f32 %v1313_v30, %v461_v28  ;;  %v532_v23 = vadd.f32 %v1313_v30, %v462_v31  ;;  %591 = vst.msk [vmem:[%s1752_s3 + $0xf0] sm:$0xff] %vm78_vm0, %v527_v34  ;;  %592 = vst.msk [vmem:[%s1752_s3 + $0xf8] sm:$0xff] %vm78_vm0, %v528_v33  ;;  %v465_v46 = vmul.f32 %v1297_v59, %v979_v53  ;;  %v1824_v33 = vld [vmem:[#allocation23_spill] sm:$0xff] }
  0xdb   :  { %v533_v54 = vadd.f32 %v1313_v30, %v463_v24  ;;  %v534_v43 = vadd.f32 %v1313_v30, %v464_v56  ;;  %v466_v49 = vmul.f32 %v1297_v59, %v989_v5  ;;  %593 = vst.msk [vmem:[%s1752_s3 + $0x100] sm:$0xff] %vm78_vm0, %v529_v60  ;;  %594 = vst.msk [vmem:[%s1752_s3 + $0x108] sm:$0xff] %vm78_vm0, %v530_v37  ;;  %v1825_v24 = vld [vmem:[#allocation24_spill] sm:$0xff] }
  0xdc   :  { %595 = vst.msk [vmem:[%s1752_s3 + $0x110] sm:$0xff] %vm78_vm0, %v531_v40  ;;  %596 = vst.msk [vmem:[%s1752_s3 + $0x118] sm:$0xff] %vm78_vm0, %v532_v23  ;;  %v467_v53 = vmul.f32 %v1297_v59, %v999_v18  ;;  %v468_v5 = vmul.f32 %v1297_v59, %v1009_v35  ;;  %v469_v52 = vmul.f32 %v1297_v59, %v1019_v50 }
  0xdd   :  { %v470_v17 = vmul.f32 %v1297_v59, %v1813_v44  ;;  %597 = vst.msk [vmem:[%s1752_s3 + $0x120] sm:$0xff] %vm78_vm0, %v533_v54  ;;  %598 = vst.msk [vmem:[%s1752_s3 + $0x128] sm:$0xff] %vm78_vm0, %v534_v43  ;;  %v535_v18 = vadd.f32 %v1313_v30, %v465_v46  ;;  %v536_v35 = vadd.f32 %v1313_v30, %v466_v49  ;;  %v1826_v43 = vld [vmem:[#allocation25_spill] sm:$0xff]  ;;  %v1827_v49 = vld [vmem:[#allocation26_spill] sm:$0xff] }
  0xde   :  { %v471_v50 = vmul.f32 %v1297_v59, %v1039_v21  ;;  %v472_v39 = vmul.f32 %v1297_v59, %v1814_v61  ;;  %v537_v57 = vadd.f32 %v1313_v30, %v467_v53  ;;  %v538_v62 = vadd.f32 %v1313_v30, %v468_v5 }
  0xdf   :  { %v539_v32 = vadd.f32 %v1313_v30, %v469_v52  ;;  %v540_v27 = vadd.f32 %v1313_v30, %v470_v17  ;;  %599 = vst.msk [vmem:[%s1752_s3 + $0x130] sm:$0xff] %vm78_vm0, %v535_v18  ;;  %600 = vst.msk [vmem:[%s1752_s3 + $0x138] sm:$0xff] %vm78_vm0, %v536_v35  ;;  %v473_v20 = vmul.f32 %v1297_v59, %v1059_v58 }
  0xe0   :  { %v541_v21 = vadd.f32 %v1313_v30, %v471_v50  ;;  %v542_v9 = vadd.f32 %v1313_v30, %v472_v39  ;;  %v474_v6 = vmul.f32 %v1297_v59, %v1815_v26  ;;  %601 = vst.msk [vmem:[%s1752_s3 + $0x140] sm:$0xff] %vm78_vm0, %v537_v57  ;;  %602 = vst.msk [vmem:[%s1752_s3 + $0x148] sm:$0xff] %vm78_vm0, %v538_v62 }
  0xe1   :  { %603 = vst.msk [vmem:[%s1752_s3 + $0x150] sm:$0xff] %vm78_vm0, %v539_v32  ;;  %604 = vst.msk [vmem:[%s1752_s3 + $0x158] sm:$0xff] %vm78_vm0, %v540_v27  ;;  %v475_v58 = vmul.f32 %v1297_v59, %v1079_v42  ;;  %v476_v38 = vmul.f32 %v1297_v59, %v1816_v29  ;;  %v477_v41 = vmul.f32 %v1297_v59, %v1099_v14 }
  0xe2   :  { %v478_v63 = vmul.f32 %v1297_v59, %v1817_v47  ;;  %605 = vst.msk [vmem:[%s1752_s3 + $0x160] sm:$0xff] %vm78_vm0, %v541_v21  ;;  %606 = vst.msk [vmem:[%s1752_s3 + $0x168] sm:$0xff] %vm78_vm0, %v542_v9  ;;  %v543_v42 = vadd.f32 %v1313_v30, %v473_v20  ;;  %v544_v55 = vadd.f32 %v1313_v30, %v474_v6 }
  0xe3   :  { %v479_v14 = vmul.f32 %v1297_v59, %v1818_v36  ;;  %v480_v0 = vmul.f32 %v1297_v59, %v1819_v15  ;;  %v545_v1 = vadd.f32 %v1313_v30, %v475_v58  ;;  %v546_v2 = vadd.f32 %v1313_v30, %v476_v38 }
  0xe4   :  { %v547_v3 = vadd.f32 %v1313_v30, %v477_v41  ;;  %v548_v7 = vadd.f32 %v1313_v30, %v478_v63  ;;  %607 = vst.msk [vmem:[%s1752_s3 + $0x170] sm:$0xff] %vm78_vm0, %v543_v42  ;;  %608 = vst.msk [vmem:[%s1752_s3 + $0x178] sm:$0xff] %vm78_vm0, %v544_v55  ;;  %v481_v8 = vmul.f32 %v1297_v59, %v1820_v16 }
  0xe5   :  { %v549_v10 = vadd.f32 %v1313_v30, %v479_v14  ;;  %v550_v13 = vadd.f32 %v1313_v30, %v480_v0  ;;  %v482_v19 = vmul.f32 %v1297_v59, %v1149_v48  ;;  %609 = vst.msk [vmem:[%s1752_s3 + $0x180] sm:$0xff] %vm78_vm0, %v545_v1  ;;  %610 = vst.msk [vmem:[%s1752_s3 + $0x188] sm:$0xff] %vm78_vm0, %v546_v2 }
  0xe6   :  { %611 = vst.msk [vmem:[%s1752_s3 + $0x190] sm:$0xff] %vm78_vm0, %v547_v3  ;;  %612 = vst.msk [vmem:[%s1752_s3 + $0x198] sm:$0xff] %vm78_vm0, %v548_v7  ;;  %v483_v48 = vmul.f32 %v1297_v59, %v1164_v4  ;;  %v484_v51 = vmul.f32 %v1297_v59, %v1821_v22  ;;  %v485_v28 = vmul.f32 %v1297_v59, %v1822_v25 }
  0xe7   :  { %v486_v31 = vmul.f32 %v1297_v59, %v1823_v12  ;;  %613 = vst.msk [vmem:[%s1752_s3 + $0x1a0] sm:$0xff] %vm78_vm0, %v549_v10  ;;  %614 = vst.msk [vmem:[%s1752_s3 + $0x1a8] sm:$0xff] %vm78_vm0, %v550_v13  ;;  %v551_v4 = vadd.f32 %v1313_v30, %v481_v8  ;;  %v552_v34 = vadd.f32 %v1313_v30, %v482_v19 }
  0xe8   :  { %v487_v11 = vmul.f32 %v1297_v59, %v1824_v33  ;;  %v488_v45 = vmul.f32 %v1297_v59, %v1825_v24  ;;  %v553_v56 = vadd.f32 %v1313_v30, %v483_v48  ;;  %v554_v60 = vadd.f32 %v1313_v30, %v484_v51 }
  0xe9   :  { %v555_v37 = vadd.f32 %v1313_v30, %v485_v28  ;;  %v556_v40 = vadd.f32 %v1313_v30, %v486_v31  ;;  %615 = vst.msk [vmem:[%s1752_s3 + $0x1b0] sm:$0xff] %vm78_vm0, %v551_v4  ;;  %616 = vst.msk [vmem:[%s1752_s3 + $0x1b8] sm:$0xff] %vm78_vm0, %v552_v34  ;;  %v489_v46 = vmul.f32 %v1297_v59, %v1826_v43 }
  0xea   :  { %v557_v23 = vadd.f32 %v1313_v30, %v487_v11  ;;  %v558_v54 = vadd.f32 %v1313_v30, %v488_v45  ;;  %v490_v53 = vmul.f32 %v1297_v59, %v1827_v49  ;;  %617 = vst.msk [vmem:[%s1752_s3 + $0x1c0] sm:$0xff] %vm78_vm0, %v553_v56  ;;  %618 = vst.msk [vmem:[%s1752_s3 + $0x1c8] sm:$0xff] %vm78_vm0, %v554_v60 }
  0xeb   :  { %619 = vst.msk [vmem:[%s1752_s3 + $0x1d0] sm:$0xff] %vm78_vm0, %v555_v37  ;;  %620 = vst.msk [vmem:[%s1752_s3 + $0x1d8] sm:$0xff] %vm78_vm0, %v556_v40  ;;  %v559_v59 = vadd.f32 %v1313_v30, %v489_v46 }
  0xec   :  { %621 = vst.msk [vmem:[%s1752_s3 + $0x1e0] sm:$0xff] %vm78_vm0, %v557_v23  ;;  %622 = vst.msk [vmem:[%s1752_s3 + $0x1e8] sm:$0xff] %vm78_vm0, %v558_v54  ;;  %v560_v5 = vadd.f32 %v1313_v30, %v490_v53 }
  0xed   :  { %623 = vst.msk [vmem:[%s1752_s3 + $0x1f0] sm:$0xff] %vm78_vm0, %v559_v59 }
  0xee   :  { %624 = vst.msk [vmem:[%s1752_s3 + $0x1f8] sm:$0xff] %vm78_vm0, %v560_v5 }

</bundles_post_ra>
